<compile_context>
chip_gen: v6e
topology: v6e:2x2x1
jax: 0.10.0
libtpu: 0.0.40
codegen_flags: <defaults>
</compile_context>

<pallas_src>
import functools
import math

import jax
import jax.numpy as jnp
from jax.experimental import pallas as pl
from jax.experimental.pallas import tpu as pltpu


def _loss_terms(logits_f32, target_f32, max_label):
    """Elementwise loss terms; select-before-square, bit-identical to torch."""
    d = jnp.where(
        target_f32 <= max_label,
        logits_f32 - target_f32,
        jnp.maximum(0.0, max_label - logits_f32 + 1.0),
    )
    return d * d


def _custom_loss_kernel(logits_ref, target_ref, partial_ref, *,
                        max_label, tile_rows, lane_width, tail_rows):
    step = pl.program_id(0)

    @pl.when(step == 0)
    def _():
        partial_ref[...] = jnp.zeros_like(partial_ref)

    x = logits_ref[...].astype(jnp.float32)
    tgt = target_ref[...].astype(jnp.float32)
    vals = _loss_terms(x, tgt, max_label)

    def _accumulate(v):
        # Layout-preserving reshape (tile_rows, LN) -> (tile_rows//8, 8, LN);
        # summing the leading axis is plain vreg-wise VPU adds (no XLU reduce,
        # no serializing scalar chain).
        partial_ref[...] += v.reshape(tile_rows // 8, 8, lane_width).sum(axis=0)

    if tail_rows:
        # Only the last grid step can see a partial (boundary) block; mask the
        # rows past the end of the array (their VMEM contents are garbage).
        is_last = step == pl.num_programs(0) - 1

        @pl.when(is_last)
        def _():
            rows = jax.lax.broadcasted_iota(
                jnp.int32, (tile_rows, lane_width), 0)
            _accumulate(jnp.where(rows < tail_rows, vals, 0.0))

        @pl.when(jnp.logical_not(is_last))
        def _():
            _accumulate(vals)
    else:
        _accumulate(vals)


def _default_max_tile_rows():
    """Generation-dependent row-tile cap (bigger blocks on 128-MiB-VMEM parts)."""
    try:
        info = pltpu.get_tpu_info()
        vmem = getattr(info, "vmem_capacity_bytes", 0) or 0
        if vmem >= 96 * 1024 * 1024:       # v5e / v6e: 128 MiB VMEM
            return 4096                    # 8 MiB f32 blocks per input
    except Exception:
        pass
    return 2048                            # v7x (64 MiB VMEM) / unknown


def custom_loss(logits, target, max_label, *,
                lane_width=512, max_tile_rows=None,
                min_kernel_elements=1 << 20, force_kernel=False):
    """Pallas implementation of CustomLoss.forward -> scalar float32 loss."""
    assert logits.shape == target.shape
    total = int(math.prod(logits.shape)) if logits.shape else 1
    max_label_f = float(max_label)

    def _jax_path():
        return jnp.mean(_loss_terms(logits.astype(jnp.float32).reshape(-1),
                                    target.astype(jnp.float32).reshape(-1),
                                    max_label_f))

    # Rows of `lane_width` handled by the kernel; always a multiple of 8 so the
    # accumulator reshape is layout-preserving and no row padding is needed.
    row_block_elems = 8 * lane_width
    kernel_rows = (total // row_block_elems) * 8
    if (total < min_kernel_elements and not force_kernel) or kernel_rows == 0:
        # Small-input fast path / nothing big enough for a single row-tile.
        return _jax_path()

    if max_tile_rows is None:
        max_tile_rows = _default_max_tile_rows()
    max_tile_rows = max(8, (int(max_tile_rows) // 8) * 8)

    tile_rows = min(max_tile_rows, kernel_rows)
    n_tiles = pl.cdiv(kernel_rows, tile_rows)
    last_tile_rows = kernel_rows - (n_tiles - 1) * tile_rows
    needs_mask = last_tile_rows != tile_rows      # last tile is partial

    kernel_elems = kernel_rows * lane_width

    flat_l = logits.reshape(-1)
    flat_t = target.reshape(-1)

    # Bulk view for the kernel.  When `total` is already a multiple of
    # 8*lane_width this is a free reshape (no copy, unlike concatenate-padding).
    l2 = flat_l[:kernel_elems].reshape(kernel_rows, lane_width)
    t2 = flat_t[:kernel_elems].reshape(kernel_rows, lane_width)

    kernel = functools.partial(
        _custom_loss_kernel,
        max_label=max_label_f,
        tile_rows=tile_rows,
        lane_width=lane_width,
        tail_rows=(last_tile_rows if needs_mask else 0),
    )

    # 2 inputs x 2 pipeline buffers x (tile_rows x lane_width x 4B) plus
    # intermediates; 48 MiB fits v7x's 64 MiB VMEM, 96 MiB only used on
    # 128-MiB parts (where 4096-row tiles are selected).
    vmem_limit = (48 << 20) if tile_rows <= 2048 else (96 << 20)

    partials = pl.pallas_call(
        kernel,
        out_shape=jax.ShapeDtypeStruct((8, lane_width), jnp.float32),
        grid_spec=pltpu.PrefetchScalarGridSpec(
            num_scalar_prefetch=0,
            grid=(n_tiles,),
            in_specs=[
                pl.BlockSpec((tile_rows, lane_width), lambda i: (i, 0)),
                pl.BlockSpec((tile_rows, lane_width), lambda i: (i, 0)),
            ],
            out_specs=pl.BlockSpec((8, lane_width), lambda i: (0, 0)),
        ),
        compiler_params=pltpu.CompilerParams(
            dimension_semantics=("arbitrary",),
            vmem_limit_bytes=vmem_limit,
        ),
    )(l2, t2)

    loss_sum = jnp.sum(partials)

    # Sub-block remainder (< 8*lane_width elements) in plain JAX — no padding.
    if kernel_elems < total:
        loss_sum = loss_sum + jnp.sum(
            _loss_terms(flat_l[kernel_elems:].astype(jnp.float32),
                        flat_t[kernel_elems:].astype(jnp.float32),
                        max_label_f))

    return loss_sum / jnp.float32(total)


def custom_loss_ref(logits, target, max_label):
    """Pure-JAX reference matching the PyTorch semantics (f32 accumulation)."""
    l = logits.astype(jnp.float32)
    t = target.astype(jnp.float32)
    return jnp.mean(_loss_terms(l, t, float(max_label)))


if __name__ == "__main__":
    key = jax.random.PRNGKey(0)
    max_label = 5.0
    k1, k2, k3, k4, k5, k6 = jax.random.split(key, 6)

    def _check(loss, ref, tol=1e-5):
        assert jnp.allclose(loss, ref, rtol=tol, atol=tol), (loss, ref)

    # Test 1: small aligned 2-D shape (total is a multiple of 8*512, so the
    # kernel sees a zero-copy reshaped view).  Both where() branches hit.
    M, N = 16, 256
    logits = jax.random.uniform(k1, (M, N), dtype=jnp.float32) * 8.0
    target = jnp.floor(
        jax.random.uniform(k2, (M, N), dtype=jnp.float32) * 10.0
    ).astype(jnp.float32)
    loss = jax.block_until_ready(
        custom_loss(logits, target, max_label, force_kernel=True))
    _check(loss, custom_loss_ref(logits, target, max_label))

    # Test 2: ragged shape — kernel handles the aligned bulk, plain-JAX tail
    # handles the < 8*512 element remainder (no padding copy anywhere).
    M2, N2 = 37, 300
    logits2 = jax.random.uniform(k3, (M2, N2), dtype=jnp.float32) * 8.0
    target2 = jnp.floor(
        jax.random.uniform(k4, (M2, N2), dtype=jnp.float32) * 10.0
    ).astype(jnp.float32)
    loss2 = jax.block_until_ready(
        custom_loss(logits2, target2, max_label, force_kernel=True))
    _check(loss2, custom_loss_ref(logits2, target2, max_label))

    # Test 3: multi-tile grid with a partial last row-tile (exercises the
    # in-kernel row mask) using a small forced tile cap.
    M3, N3 = 72, 512
    logits3 = jax.random.uniform(k5, (M3, N3), dtype=jnp.float32) * 8.0
    target3 = jnp.floor(
        jax.random.uniform(k6, (M3, N3), dtype=jnp.float32) * 10.0
    ).astype(jnp.float32)
    loss3 = jax.block_until_ready(
        custom_loss(logits3, target3, max_label,
                    max_tile_rows=32, force_kernel=True))
    _check(loss3, custom_loss_ref(logits3, target3, max_label))

    # Test 4: bf16 inputs stay bf16 in HBM (half the DMA traffic); the kernel
    # upcasts to f32 in-register.
    logits4 = (jax.random.uniform(k1, (16, 512), dtype=jnp.float32) * 8.0
               ).astype(jnp.bfloat16)
    target4 = jnp.floor(
        jax.random.uniform(k2, (16, 512), dtype=jnp.float32) * 10.0
    ).astype(jnp.bfloat16)
    loss4 = jax.block_until_ready(
        custom_loss(logits4, target4, max_label, force_kernel=True))
    _check(loss4, custom_loss_ref(logits4, target4, max_label), tol=1e-3)

    print("KERNEL_OK")
</pallas_src>

<mosaic_0001>
module attributes {stable_mosaic.version = 11 : i64} {
  func.func @_custom_loss_kernel(%arg0: i32, %arg1: memref<8x512xf32, #tpu.memory_space<vmem>>, %arg2: memref<8x512xf32, #tpu.memory_space<vmem>>, %arg3: memref<8x512xf32, #tpu.memory_space<vmem>>) attributes {dimension_semantics = [#tpu.dimension_semantics<arbitrary>], iteration_bounds = array<i64: 1>, scalar_prefetch = 0 : i64, scratch_operands = 0 : i64, tpu.core_type = #tpu.core_type<tc>, window_params = [{transform_indices = @transform_0, window_bounds = array<i64: 8, 512>}, {transform_indices = @transform_1, window_bounds = array<i64: 8, 512>}, {pipeline_mode = #tpu.pipeline_mode<synchronous>, transform_indices = @transform_2, window_bounds = array<i64: 8, 512>}]} {
    %c0_i32 = arith.constant 0 : i32
    %0 = arith.cmpi eq, %arg0, %c0_i32 : i32
    %1 = arith.extui %0 : i1 to i32
    %c0_i32_0 = arith.constant 0 : i32
    %2 = arith.cmpi ne, %1, %c0_i32_0 : i32
    scf.if %2 {
      %cst_12 = arith.constant 0.000000e+00 : f32
      %21 = vector.broadcast %cst_12 : f32 to vector<8x512xf32>
      %c0_13 = arith.constant 0 : index
      %c0_14 = arith.constant 0 : index
      %22 = vector.load %arg3[%c0_13, %c0_14] : memref<8x512xf32, #tpu.memory_space<vmem>>, vector<8x512xf32>
      tpu.vector_store %arg3[%c0_13, %c0_14], %21 {strides = array<i32>} : memref<8x512xf32, #tpu.memory_space<vmem>>, vector<8x512xf32>,
    } else {
    }
    %c0 = arith.constant 0 : index
    %c0_1 = arith.constant 0 : index
    %3 = vector.load %arg1[%c0, %c0_1] : memref<8x512xf32, #tpu.memory_space<vmem>>, vector<8x512xf32>
    %c0_2 = arith.constant 0 : index
    %c0_3 = arith.constant 0 : index
    %4 = vector.load %arg2[%c0_2, %c0_3] : memref<8x512xf32, #tpu.memory_space<vmem>>, vector<8x512xf32>
    %cst = arith.constant 5.000000e+00 : f32
    %5 = vector.broadcast %cst : f32 to vector<8x512xf32>
    %6 = arith.cmpf ole, %4, %5 : vector<8x512xf32>
    %7 = arith.subf %3, %4 : vector<8x512xf32>
    %cst_4 = arith.constant 5.000000e+00 : f32
    %8 = vector.broadcast %cst_4 : f32 to vector<8x512xf32>
    %9 = arith.subf %8, %3 : vector<8x512xf32>
    %cst_5 = arith.constant 1.000000e+00 : f32
    %10 = vector.broadcast %cst_5 : f32 to vector<8x512xf32>
    %11 = arith.addf %9, %10 : vector<8x512xf32>
    %cst_6 = arith.constant 0.000000e+00 : f32
    %12 = vector.broadcast %cst_6 : f32 to vector<8x512xf32>
    %13 = arith.maximumf %12, %11 : vector<8x512xf32>
    %14 = arith.select %6, %7, %13 : vector<8x512xi1>, vector<8x512xf32>
    %15 = arith.mulf %14, %14 : vector<8x512xf32>
    %c0_7 = arith.constant 0 : index
    %c0_8 = arith.constant 0 : index
    %16 = vector.load %arg3[%c0_7, %c0_8] : memref<8x512xf32, #tpu.memory_space<vmem>>, vector<8x512xf32>
    %17 = vector.shape_cast %15 : vector<8x512xf32> to vector<1x8x512xf32>
    %cst_9 = arith.constant dense<0.000000e+00> : vector<8x512xf32>
    %18 = vector.multi_reduction <add>, %17, %cst_9 [0] : vector<1x8x512xf32> to vector<8x512xf32>
    %19 = arith.addf %16, %18 : vector<8x512xf32>
    %c0_10 = arith.constant 0 : index
    %c0_11 = arith.constant 0 : index
    %20 = vector.load %arg3[%c0_10, %c0_11] : memref<8x512xf32, #tpu.memory_space<vmem>>, vector<8x512xf32>
    tpu.vector_store %arg3[%c0_10, %c0_11], %19 {strides = array<i32>} : memref<8x512xf32, #tpu.memory_space<vmem>>, vector<8x512xf32>,
    return
  }
  func.func @transform_0(%arg0: i32) -> (i32, i32) {
    %c0_i32 = arith.constant 0 : i32
    %c0_i32_0 = arith.constant 0 : i32
    return %arg0, %c0_i32 : i32, i32
  }
  func.func @transform_1(%arg0: i32) -> (i32, i32) {
    %c0_i32 = arith.constant 0 : i32
    %c0_i32_0 = arith.constant 0 : i32
    return %arg0, %c0_i32 : i32, i32
  }
  func.func @transform_2(%arg0: i32) -> (i32, i32) {
    %c0_i32 = arith.constant 0 : i32
    %c0_i32_0 = arith.constant 0 : i32
    %c0_i32_1 = arith.constant 0 : i32
    return %c0_i32, %c0_i32_0 : i32, i32
  }
}

</mosaic_0001>

<bundles_post_ra>
// kernel: tpu_custom_call.1
= control target key start
LH: loop header
LB: loop body
LE: loop exit
PB: predicated region body
PF: predicated region fallthrough
CT: control target
= control target key end

     0   :  { %7 = vsyncpa [#allocation3], 0  ;;  %s209_s0 = inlined_call_operand.hbm [shape: f32[8,512], index: 0, kind: input, shape index: {}]   ;;  %s210_s1 = inlined_call_operand.hbm [shape: f32[8,512], index: 1, kind: input, shape index: {}]   ;;  %s211_s2 = inlined_call_operand.hbm [shape: f32[8,512], index: 2, kind: output, shape index: {}]  }
   0x1   :  { %8 = vsyncpa [#allocation6], 0 }
   0x2   :  { %9 = vsyncpa [#allocation4], 0  ;;  %s182_s9 = smov [#allocation2]   ;;  %s183_s11 = smov [#allocation5]  }
   0x3   :  { %s16_s10 = sshll.u32 %s182_s9, 4  ;;  %s26_s12 = sshll.u32 %s183_s11, 4  ;;  %s17_s10 = int_to_ptr.vmem [resolvable:$true] %s16_s10  ;;  %s27_s12 = int_to_ptr.vmem [resolvable:$true] %s26_s12 }
   0x4   :  { %s124_s13 = scalar_lea.vmem %s17_s10, 512  ;;  %p129_p1 = scmp.lt.s32.totalorder %s17_s10, %s17_s10 }
   0x5   :  { %p125_p0 = scmp.ne.s32.totalorder %s17_s10, %s124_s13  ;;  %p130_p2 = scmp.lt.s32.totalorder %s124_s13, %s124_s13 }
   0x7   :  { %p131_p3 = por %p130_p2, %p129_p1 }
   0x9   :  { %p132_p4 = pnand %p131_p3, %p125_p0 }
   0xb   :  { %135 = shalt.err (!%p132_p4)
}
   0xc   :  { %19 = dma.hbm_to_vmem [thread:$0]  %s209_s0, 512, %s17_s10, [#allocation3]  }
   0xd   :  { %s144_s16 = scalar_lea.vmem %s27_s12, 512  ;;  %p149_p6 = scmp.lt.s32.totalorder %s27_s12, %s27_s12 }
   0xe   :  { %p145_p5 = scmp.ne.s32.totalorder %s27_s12, %s144_s16  ;;  %p150_p7 = scmp.lt.s32.totalorder %s144_s16, %s144_s16 }
  0x10   :  { %p151_p8 = por %p150_p7, %p149_p6 }
  0x12   :  { %p152_p9 = pnand %p151_p8, %p145_p5 }
  0x14   :  { %155 = shalt.err (!%p152_p9)
}
  0x15   :  { %29 = dma.hbm_to_vmem [thread:$0]  %s210_s1, 512, %s27_s12, [#allocation6]  }
  0x16   :  { %176 = dma.done.wait [#allocation3], 512  }
  0x17   :  { %177 = vsyncadd [#allocation3], 4294966784 }
  0x18   :  { %178 = dma.done.wait [#allocation6], 512  }
  0x19   :  { %179 = vsyncadd [#allocation6], 4294966784  ;;  %v44_v0 = vld [vmem:[#allocation2] sm:$0xff]  ;;  %v45_v2 = vld [vmem:[#allocation2 + $0x8] sm:$0xff]  ;;  %s184_s0 = smov [#allocation7]  }
  0x1a   :  { %v48_v1 = vld [vmem:[#allocation5] sm:$0xff]  ;;  %v60_v3 = vsub.f32 5.0, %v44_v0  ;;  %v49_v4 = vld [vmem:[#allocation5 + $0x8] sm:$0xff]  ;;  %v61_v5 = vsub.f32 5.0, %v45_v2  ;;  %v46_v6 = vld [vmem:[#allocation2 + $0x10] sm:$0xff]  ;;  %s102_s1 = sshll.u32 %s184_s0, 4  ;;  %s103_s1 = int_to_ptr.vmem [resolvable:$true] %s102_s1 }
  0x1b   :  { %v56_v7 = vsub.f32 %v44_v0, %v48_v1  ;;  %v50_v8 = vld [vmem:[#allocation5 + $0x10] sm:$0xff]  ;;  %v47_v9 = vld [vmem:[#allocation2 + $0x18] sm:$0xff]  ;;  %v57_v11 = vsub.f32 %v45_v2, %v49_v4  ;;  %v62_v13 = vsub.f32 5.0, %v46_v6  ;;  %vm52_vm0 = vcmp.le.f32.partialorder %v48_v1, 5.0  ;;  %s156_s19 = scalar_lea.vmem %s103_s1, 512  ;;  %p161_p11 = scmp.lt.s32.totalorder %s103_s1, %s103_s1 }
  0x1c   :  { %v64_v10 = vadd.f32 1.0, %v60_v3  ;;  %v65_v12 = vadd.f32 1.0, %v61_v5  ;;  %v51_v14 = vld [vmem:[#allocation5 + $0x18] sm:$0xff]  ;;  %vm53_vm1 = vcmp.le.f32.partialorder %v49_v4, 5.0  ;;  %v63_v15 = vsub.f32 5.0, %v47_v9  ;;  %p157_p10 = scmp.ne.s32.totalorder %s103_s1, %s156_s19  ;;  %p162_p12 = scmp.lt.s32.totalorder %s156_s19, %s156_s19 }
  0x1d   :  { %v58_v18 = vsub.f32 %v46_v6, %v50_v8  ;;  %v66_v19 = vadd.f32 1.0, %v62_v13  ;;  %vm54_vm2 = vcmp.le.f32.partialorder %v50_v8, 5.0  ;;  %v59_v20 = vsub.f32 %v47_v9, %v51_v14 }
  0x1e   :  { %v68_v16 = vmax.f32 %v64_v10, 0.0  ;;  %v69_v17 = vmax.f32 %v65_v12, 0.0  ;;  %v67_v21 = vadd.f32 1.0, %v63_v15  ;;  %vm55_vm3 = vcmp.le.f32.partialorder %v51_v14, 5.0  ;;  %p163_p13 = por %p162_p12, %p161_p11 }
  0x1f   :  { %v70_v24 = vmax.f32 %v66_v19, 0.0 }
  0x20   :  { %v72_v22 = vsel %vm52_vm0, %v56_v7, %v68_v16  ;;  %v73_v23 = vsel %vm53_vm1, %v57_v11, %v69_v17  ;;  %v71_v27 = vmax.f32 %v67_v21, 0.0  ;;  %p164_p0 = pnand %p163_p13, %p157_p10 }
  0x21   :  { %v76_v25 = vmul.f32 %v72_v22, %v72_v22  ;;  %v77_v26 = vmul.f32 %v73_v23, %v73_v23  ;;  %v74_v28 = vsel %vm54_vm2, %v58_v18, %v70_v24 }
  0x22   :  { %v78_v29 = vmul.f32 %v74_v28, %v74_v28  ;;  %v75_v30 = vsel %vm55_vm3, %v59_v20, %v71_v27 }
  0x23   :  { %v79_v31 = vmul.f32 %v75_v30, %v75_v30  ;;  %92 = vst [vmem:[#allocation7] sm:$0xff] %v76_v25  ;;  %93 = vst [vmem:[#allocation7 + $0x8] sm:$0xff] %v77_v26 }
  0x24   :  { %94 = vst [vmem:[#allocation7 + $0x10] sm:$0xff] %v78_v29 }
  0x25   :  { %95 = vst [vmem:[#allocation7 + $0x18] sm:$0xff] %v79_v31 }
  0x26   :  { %167 = shalt.err (!%p164_p0)
}
  0x27   :  { %105 = dma.vmem_to_hbm [thread:$0]  %s103_s1, 512, %s211_s2, [#allocation4]  }
  0x28   :  { %180 = dma.done.wait [#allocation4], 512  }
  0x29   :  { %181 = vsyncadd [#allocation4], 4294966784 }
  0x2a   :  { %109 = vsyncpa [#allocation3], 1 }
  0x2b   :  { %110 = vsyncpa [#allocation6], 1 }
  0x2c   :  { %111 = vsyncpa [#allocation4], 1 }

</bundles_post_ra>
